<compile_context>
chip_gen: v6e
topology: v6e:2x2x1
jax: 0.10.0
libtpu: 0.0.40
codegen_flags: <defaults>
</compile_context>

<pallas_src>
import jax
import jax.numpy as jnp
from jax.experimental import pallas as pl
from jax.experimental.pallas import tpu as pltpu

_LANE = 128
_TARGET_CHUNK_BYTES = 4 * 1024 * 1024   # ~4 MiB per DMA chunk
_MIN_CHUNKS = 4                         # >= 2x TensorCores so "parallel" shards


def _resolve_size(size, total):
    """Resolve a torch-style view size tuple (may contain a single -1)."""
    size = tuple(int(s) for s in size)
    if size.count(-1) > 1:
        raise ValueError("only one dimension can be inferred (-1)")
    if -1 in size:
        idx = size.index(-1)
        known = 1
        for j, s in enumerate(size):
            if j != idx:
                known *= s
        if known == 0 or total % known != 0:
            raise ValueError(
                f"cannot view tensor of {total} elements as {size}")
        size = size[:idx] + (total // known,) + size[idx + 1:]
    prod = 1
    for s in size:
        prod *= s
    if prod != total:
        raise ValueError(f"view size {size} incompatible with {total} elements")
    return size


def _sublane_multiple(dtype):
    # f32 -> 8, bf16 -> 16, int8/fp8 -> 32 (keep packed-row DMA offsets aligned).
    itemsize = jnp.dtype(dtype).itemsize
    return max(8, 32 // itemsize)


def _pick_slab_width(total, sub_mult):
    """Widest lane-dense slab width (multiple of 128) s.t. rows = total/W is a
    multiple of the sublane packing.  None if the total is not aligned."""
    for w in (1024, 512, 256, 128):
        if total % (sub_mult * w) == 0:
            return w
    return None


def _pick_tile_rows(rows, w, itemsize, sub_mult):
    """Largest divisor of `rows` that is a multiple of sub_mult, <= ~4 MiB of
    data, and leaves at least _MIN_CHUNKS grid steps when possible."""
    max_by_bytes = max(sub_mult, _TARGET_CHUNK_BYTES // (w * itemsize))
    max_by_chunks = max(sub_mult, rows // _MIN_CHUNKS)
    cap = min(rows, max_by_bytes, max_by_chunks)
    best = sub_mult                      # rows % sub_mult == 0 by construction
    t = sub_mult
    while t <= cap:
        if rows % t == 0:
            best = t
        t += sub_mult
    return best


def _make_dma_copy_kernel(tile_rows, n_dma, sub_mult):
    """HBM->HBM chunk copy: n_dma concurrent DMAs per grid step, no VMEM staging."""
    sub_rows = tile_rows // n_dma

    def kernel(x_hbm, o_hbm, sems):
        base = pl.multiple_of(pl.program_id(0) * tile_rows, sub_mult)
        copies = []
        for j in range(n_dma):                       # static unroll
            r0 = pl.multiple_of(base + j * sub_rows, sub_mult)
            cp = pltpu.make_async_copy(
                x_hbm.at[pl.ds(r0, sub_rows), :],
                o_hbm.at[pl.ds(r0, sub_rows), :],
                sems.at[j],
            )
            cp.start()
            copies.append(cp)
        for cp in copies:
            cp.wait()

    return kernel


def reshape_pallas(x, size, *, force_kernel=False):
    """Equivalent of torch `x.view(size)`.

    Default: metadata-only jnp.reshape (the optimum — zero HBM traffic).
    force_kernel=True: route the copy through a Pallas HBM->HBM DMA kernel
    (demonstration / benchmarking path) when the total is lane/sublane aligned.
    """
    total = int(x.size)
    out_shape = _resolve_size(size, total)

    itemsize = jnp.dtype(x.dtype).itemsize
    sub_mult = _sublane_multiple(x.dtype)
    w = _pick_slab_width(total, sub_mult) if total > 0 else None

    if not force_kernel or w is None:
        # Pure view: row-major reshape of a contiguous array is free.
        # (Also covers empty tensors and totals not divisible by sub_mult*128.)
        return jnp.reshape(x, out_shape)

    rows = total // w                    # multiple of sub_mult by construction
    tile_rows = _pick_tile_rows(rows, w, itemsize, sub_mult)
    n_dma = 2 if (tile_rows % (2 * sub_mult) == 0) else 1
    grid = (rows // tile_rows,)          # tile_rows divides rows: no ragged tail

    # Free metadata reshape to a lane-dense 2D slab (no pad, no slice).
    x2d = jnp.reshape(x, (rows, w))

    y2d = pl.pallas_call(
        _make_dma_copy_kernel(tile_rows, n_dma, sub_mult),
        out_shape=jax.ShapeDtypeStruct((rows, w), x.dtype),
        grid=grid,
        in_specs=[pl.BlockSpec(memory_space=pl.ANY)],
        out_specs=pl.BlockSpec(memory_space=pl.ANY),
        scratch_shapes=[pltpu.SemaphoreType.DMA((n_dma,))],
        compiler_params=pltpu.CompilerParams(
            dimension_semantics=("parallel",),
            has_side_effects=True,
        ),
        cost_estimate=pl.CostEstimate(
            flops=0,
            transcendentals=0,
            bytes_accessed=2 * total * itemsize,
        ),
    )(x2d)

    # Free metadata reshape to the requested view shape.
    return jnp.reshape(y2d, out_shape)


class Reshape:
    """JAX/Pallas port of the PyTorch Reshape module (no parameters)."""

    def __init__(self, size):
        self.size = size

    def __call__(self, x):
        return reshape_pallas(x, self.size)


if __name__ == "__main__":
    key = jax.random.PRNGKey(0)

    # Typical AE usage: flatten channel/spatial dims per batch.
    # Small input (8 KiB) -> pure-view path (the recommended optimum).
    x = jax.random.normal(key, (2, 4, 16, 16), dtype=jnp.float32)
    module = Reshape((2, -1))
    y = jax.block_until_ready(module(x))
    ref = x.reshape(2, -1)
    assert y.shape == ref.shape and y.dtype == ref.dtype
    assert bool(jnp.all(y == ref)), "reshape does not match reference view"

    # Explicit (no -1) target shape, same total.
    y2 = jax.block_until_ready(Reshape((2, 4, 256))(x))
    assert bool(jnp.all(y2 == x.reshape(2, 4, 256)))

    # Unaligned total -> pure-view path.
    x_small = jax.random.normal(key, (3, 5), dtype=jnp.float32)
    y3 = jax.block_until_ready(Reshape((15,))(x_small))
    assert bool(jnp.all(y3 == x_small.reshape(15)))

    # Exercise the forced HBM->HBM DMA kernel once on an aligned slab
    # (512 KiB f32 -> 4 grid chunks x 2 concurrent DMAs per chunk).
    x_big = jax.random.normal(key, (2, 4, 128, 128), dtype=jnp.float32)
    y4 = jax.block_until_ready(reshape_pallas(x_big, (2, -1), force_kernel=True))
    ref4 = x_big.reshape(2, -1)
    assert y4.shape == ref4.shape and y4.dtype == ref4.dtype
    assert bool(jnp.all(y4 == ref4)), "Pallas DMA reshape does not match reference"

    print("KERNEL_OK")
</pallas_src>

<mosaic_0001>
module attributes {stable_mosaic.version = 11 : i64} {
  func.func @kernel(%arg0: i32, %arg1: memref<128x1024xf32, #tpu.memory_space<any>>, %arg2: memref<128x1024xf32, #tpu.memory_space<any>>, %arg3: memref<2x!tpu.dma_semaphore, #tpu.memory_space<semaphore_mem>>) attributes {dimension_semantics = [#tpu.dimension_semantics<parallel>], iteration_bounds = array<i64: 4>, scalar_prefetch = 0 : i64, scratch_operands = 1 : i64, tpu.core_type = #tpu.core_type<tc>, window_params = [{}, {}]} {
    %c32_i32 = arith.constant 32 : i32
    %0 = arith.muli %arg0, %c32_i32 : i32
    %1 = tpu.assume_multiple %0, 8 : i32
    %c0_i32 = arith.constant 0 : i32
    %2 = arith.addi %1, %c0_i32 : i32
    %3 = tpu.assume_multiple %2, 8 : i32
    %c0_i32_0 = arith.constant 0 : i32
    %c0_i32_1 = arith.constant 0 : i32
    %4 = tpu.memref_slice %arg1[%3, %c0_i32_1] : memref<128x1024xf32, #tpu.memory_space<any>> -> memref<16x1024xf32, #tpu.memory_space<any>>
    %c0_i32_2 = arith.constant 0 : i32
    %5 = tpu.memref_slice %arg2[%3, %c0_i32_2] : memref<128x1024xf32, #tpu.memory_space<any>> -> memref<16x1024xf32, #tpu.memory_space<any>>
    %6 = tpu.memref_slice %arg3[%c0_i32_0] : memref<2x!tpu.dma_semaphore, #tpu.memory_space<semaphore_mem>> -> memref<1x!tpu.dma_semaphore, #tpu.memory_space<semaphore_mem>>
    %7 = tpu.memref_squeeze %6 : memref<1x!tpu.dma_semaphore, #tpu.memory_space<semaphore_mem>> -> memref<!tpu.dma_semaphore, #tpu.memory_space<semaphore_mem>>
    tpu.enqueue_dma source(%4 : memref<16x1024xf32, #tpu.memory_space<any>>) target(%5 : memref<16x1024xf32, #tpu.memory_space<any>>) target_semaphore(%7 : memref<!tpu.dma_semaphore, #tpu.memory_space<semaphore_mem>>)
    %c16_i32 = arith.constant 16 : i32
    %8 = arith.addi %1, %c16_i32 : i32
    %9 = tpu.assume_multiple %8, 8 : i32
    %c1_i32 = arith.constant 1 : i32
    %c0_i32_3 = arith.constant 0 : i32
    %10 = tpu.memref_slice %arg1[%9, %c0_i32_3] : memref<128x1024xf32, #tpu.memory_space<any>> -> memref<16x1024xf32, #tpu.memory_space<any>>
    %c0_i32_4 = arith.constant 0 : i32
    %11 = tpu.memref_slice %arg2[%9, %c0_i32_4] : memref<128x1024xf32, #tpu.memory_space<any>> -> memref<16x1024xf32, #tpu.memory_space<any>>
    %12 = tpu.memref_slice %arg3[%c1_i32] : memref<2x!tpu.dma_semaphore, #tpu.memory_space<semaphore_mem>> -> memref<1x!tpu.dma_semaphore, #tpu.memory_space<semaphore_mem>>
    %13 = tpu.memref_squeeze %12 : memref<1x!tpu.dma_semaphore, #tpu.memory_space<semaphore_mem>> -> memref<!tpu.dma_semaphore, #tpu.memory_space<semaphore_mem>>
    tpu.enqueue_dma source(%10 : memref<16x1024xf32, #tpu.memory_space<any>>) target(%11 : memref<16x1024xf32, #tpu.memory_space<any>>) target_semaphore(%13 : memref<!tpu.dma_semaphore, #tpu.memory_space<semaphore_mem>>)
    %c0_i32_5 = arith.constant 0 : i32
    %c0_i32_6 = arith.constant 0 : i32
    %14 = tpu.memref_slice %arg1[%3, %c0_i32_6] : memref<128x1024xf32, #tpu.memory_space<any>> -> memref<16x1024xf32, #tpu.memory_space<any>>
    %c0_i32_7 = arith.constant 0 : i32
    %15 = tpu.memref_slice %arg2[%3, %c0_i32_7] : memref<128x1024xf32, #tpu.memory_space<any>> -> memref<16x1024xf32, #tpu.memory_space<any>>
    %16 = tpu.memref_slice %arg3[%c0_i32_5] : memref<2x!tpu.dma_semaphore, #tpu.memory_space<semaphore_mem>> -> memref<1x!tpu.dma_semaphore, #tpu.memory_space<semaphore_mem>>
    %17 = tpu.memref_squeeze %16 : memref<1x!tpu.dma_semaphore, #tpu.memory_space<semaphore_mem>> -> memref<!tpu.dma_semaphore, #tpu.memory_space<semaphore_mem>>
    tpu.wait_dma2 semaphore(%17 : memref<!tpu.dma_semaphore, #tpu.memory_space<semaphore_mem>>) src(%14 : memref<16x1024xf32, #tpu.memory_space<any>>) dst(%15 : memref<16x1024xf32, #tpu.memory_space<any>>)
    %c1_i32_8 = arith.constant 1 : i32
    %c0_i32_9 = arith.constant 0 : i32
    %18 = tpu.memref_slice %arg1[%9, %c0_i32_9] : memref<128x1024xf32, #tpu.memory_space<any>> -> memref<16x1024xf32, #tpu.memory_space<any>>
    %c0_i32_10 = arith.constant 0 : i32
    %19 = tpu.memref_slice %arg2[%9, %c0_i32_10] : memref<128x1024xf32, #tpu.memory_space<any>> -> memref<16x1024xf32, #tpu.memory_space<any>>
    %20 = tpu.memref_slice %arg3[%c1_i32_8] : memref<2x!tpu.dma_semaphore, #tpu.memory_space<semaphore_mem>> -> memref<1x!tpu.dma_semaphore, #tpu.memory_space<semaphore_mem>>
    %21 = tpu.memref_squeeze %20 : memref<1x!tpu.dma_semaphore, #tpu.memory_space<semaphore_mem>> -> memref<!tpu.dma_semaphore, #tpu.memory_space<semaphore_mem>>
    tpu.wait_dma2 semaphore(%21 : memref<!tpu.dma_semaphore, #tpu.memory_space<semaphore_mem>>) src(%18 : memref<16x1024xf32, #tpu.memory_space<any>>) dst(%19 : memref<16x1024xf32, #tpu.memory_space<any>>)
    return
  }
}

</mosaic_0001>

<bundles_post_ra>
// kernel: tpu_custom_call.1
= control target key start
LH: loop header
LB: loop body
LE: loop exit
PB: predicated region body
PF: predicated region fallthrough
CT: control target
= control target key end

     0   :  { %s109_s6 = smov 0   ;;  %s139_s0 = inlined_call_operand.hbm [shape: f32[128,1024], index: 0, kind: input, shape index: {}]   ;;  %s140_s1 = inlined_call_operand.hbm [shape: f32[128,1024], index: 1, kind: output, shape index: {}]  }
   0x1 LB: > { %s76_s7 = sshll.u32 %s111_s6, 5  ;;  %s113_s18 = smov [#allocation2]   ;;  %s111_s6 = sphi %s109_s6, %s11_s6  }
   0x2   : > { %s14_s8 = sshra.s32 %s76_s7, 3  ;;  %s28_s9 = sadd.s32 16, %s76_s7 }
   0x3   : > { %s85_s10 = sshll.u32 %s14_s8, 10  ;;  %s29_s11 = sshra.s32 %s28_s9, 3 }
   0x4   : > { %s18_s14 = scalar_lea.hbm %s139_s0, %s85_s10  ;;  %s20_s17 = scalar_lea.hbm %s140_s1, %s85_s10 }
   0x5   : > { %s114_s19 = smov 131072   ;;  %s115_s20 = smov 0  }
   0x6   : > { %27 = dma.general %s18_s14, 2048, %s20_s17, %s113_s18, %s114_s19, [#allocation4], %s115_s20, 0  }
   0x7   : > { %s87_s21 = sshll.u32 %s29_s11, 10  ;;  %s116_s28 = smov [#allocation2 + $0x1]  }
   0x8   : > { %s33_s24 = scalar_lea.hbm %s139_s0, %s87_s21  ;;  %s35_s27 = scalar_lea.hbm %s140_s1, %s87_s21 }
   0x9   : > { %43 = dma.general %s33_s24, 2048, %s35_s27, %s116_s28, %s114_s19, [#allocation6], %s115_s20, 0  }
   0xa   : > { %105 = dma.done.wait [#allocation2], 2048 }
   0xb   : > { %106 = vsyncadd [#allocation2], 4294965248 }
   0xc   : > { %107 = dma.done.wait [#allocation2 + $0x1], 2048 }
   0xd   : > { %108 = vsyncadd [#allocation2 + $0x1], 4294965248  ;;  %s11_s6 = sadd.s32 1, %s111_s6  }
   0xe   : > { %p8_p0 = scmp.ge.s32.totalorder %s11_s6, 4  }
  0x10   :  { %10 = sbr.rel (!%p8_p0) target bundleno = 1 (0x1), region = 25 }
  0x15   :  { %50 = vsyncmov [#allocation2] }
  0x18   :  { %s51_s29 = vpop.sfrf %50 }
  0x19   :  { %p83_p1 = scmp.ne.s32.totalorder %s51_s29, 0 }
  0x1b   :  { %55 = shalt.err (%p83_p1)  }
  0x1c   :  { %57 = vsyncmov [#allocation2 + $0x1] }
  0x1f   :  { %s58_s30 = vpop.sfrf %57 }
  0x20   :  { %p84_p2 = scmp.ne.s32.totalorder %s58_s30, 0 }
  0x22   :  { %62 = shalt.err (%p84_p2)  }

</bundles_post_ra>
